<compile_context>
chip_gen: v5e
topology: v5e:2x2
jax: 0.10.0
libtpu: 0.0.40
codegen_flags: <defaults>
</compile_context>

<pallas_src>
import functools

import numpy as np
import jax
import jax.numpy as jnp
from jax.experimental import pallas as pl
from jax.experimental.pallas import tpu as pltpu


def _adaptive_pool_matrix(in_size: int, out_size: int) -> np.ndarray:
    """Row-stochastic matrix P (out_size, in_size) reproducing
    torch.nn.AdaptiveAvgPool1d window semantics: y = P @ x."""
    P = np.zeros((out_size, in_size), dtype=np.float32)
    for i in range(out_size):
        start = (i * in_size) // out_size
        end = -(-((i + 1) * in_size) // out_size)  # ceil((i+1)*in/out)
        P[i, start:end] = 1.0 / float(end - start)
    return P


def _encoder_kernel(p2dt_ref, x_ref, o_ref, *, batch_block):
    """One batch-block per grid step.

    p2dt_ref: (H*W, E*E)  Kronecker pooling matrix, pre-transposed (resident)
    x_ref   : (Bt, C, H*W) input features, lane-dense on H*W
    o_ref   : (Bt, E*E, C) pooled output, channels-last (lane-dense on C)
    """
    p2dt = p2dt_ref[...]  # (H*W, E*E), f32 — loaded once per step, tiny.
    for b in range(batch_block):  # small static unroll (Bt <= 8)
        xb = x_ref[b].astype(jnp.float32)                          # (C, H*W)
        y = jnp.dot(xb, p2dt, preferred_element_type=jnp.float32)  # (C, E*E)
        # Cast first (less XLU data for narrow dtypes), then small transpose.
        o_ref[b] = jnp.transpose(y.astype(o_ref.dtype))            # (E*E, C)


def _pick_batch_block(batch: int, bytes_per_image: int,
                      target_bytes: int = 4 << 20, max_unroll: int = 8) -> int:
    """Largest divisor of `batch` (<= max_unroll) whose input block stays
    within ~target_bytes, so each grid step moves a sizeable DMA chunk while
    the double-buffered working set stays well inside scoped VMEM."""
    bt = 1
    for d in range(1, min(batch, max_unroll) + 1):
        if batch % d == 0 and d * bytes_per_image <= target_bytes:
            bt = d
    return bt


def captioning_encoder_forward(images: jax.Array, encoded_image_size: int) -> jax.Array:
    """images: (B, C, H, W)  ->  (B, E, E, C)  (adaptive avg pool + permute)."""
    B, C, H, W = images.shape
    E = encoded_image_size
    HW, EE = H * W, E * E

    # Deterministic, shape-only "parameters" of the pooling head (f32 keeps
    # the averaging weights exact; the matmul accumulates in f32).
    ph = _adaptive_pool_matrix(H, E)                 # (E, H)
    pw = _adaptive_pool_matrix(W, E)                 # (E, W)
    # kron(Ph, Pw)[i*E+j, h*W+w] = Ph[i,h] * Pw[j,w]; pre-transpose for X @ P2d^T.
    p2dt = jnp.asarray(np.kron(ph, pw).T)            # (H*W, E*E)

    # Free contiguous reinterpretation of NCHW -> lane-dense last dim H*W.
    x = images.reshape(B, C, HW)

    bt = _pick_batch_block(B, C * HW * images.dtype.itemsize)
    grid = (B // bt,)

    kernel = functools.partial(_encoder_kernel, batch_block=bt)

    itemsize = images.dtype.itemsize
    cost = pl.CostEstimate(
        flops=2 * B * C * HW * EE,
        transcendentals=0,
        bytes_accessed=B * C * HW * itemsize + B * EE * C * itemsize + HW * EE * 4,
    )

    pooled = pl.pallas_call(
        kernel,
        out_shape=jax.ShapeDtypeStruct((B, EE, C), images.dtype),
        grid_spec=pltpu.PrefetchScalarGridSpec(
            num_scalar_prefetch=0,
            grid=grid,
            in_specs=[
                # Pooling matrix: constant block index -> stays resident.
                pl.BlockSpec((HW, EE), lambda i: (0, 0)),
                # Input features: Bt images per step, lane-dense on H*W.
                pl.BlockSpec((bt, C, HW), lambda i: (i, 0, 0)),
            ],
            # Channels-last output block: lane-dense, unmasked stores for
            # realistic C (multiple of 128).
            out_specs=pl.BlockSpec((bt, EE, C), lambda i: (i, 0, 0)),
        ),
        compiler_params=pltpu.CompilerParams(dimension_semantics=("parallel",)),
        cost_estimate=cost,
    )(p2dt, x)

    # (B, E*E, C) -> (B, E, E, C): pure contiguous reshape, no transpose pass.
    return pooled.reshape(B, E, E, C)


if __name__ == "__main__":
    # Small synthetic shapes: batch=2, channels=4, spatial=16, encoded size=8.
    key = jax.random.PRNGKey(0)
    B, C, H, W = 2, 4, 16, 16
    E = 8
    images = jax.random.normal(key, (B, C, H, W), dtype=jnp.float32)

    out = captioning_encoder_forward(images, E)
    out = jax.block_until_ready(out)
    assert out.shape == (B, E, E, C), out.shape

    # Pure-JAX reference (H, W divisible by E -> uniform 2x2 average pooling).
    kh, kw = H // E, W // E
    ref = images.reshape(B, C, E, kh, E, kw).mean(axis=(3, 5)).transpose(0, 2, 3, 1)
    np.testing.assert_allclose(np.asarray(out), np.asarray(ref), rtol=1e-5, atol=1e-5)

    print("KERNEL_OK")
</pallas_src>

<mosaic_0001>
module attributes {stable_mosaic.version = 11 : i64} {
  func.func @_encoder_kernel(%arg0: i32, %arg1: memref<256x64xf32, #tpu.memory_space<vmem>>, %arg2: memref<2x4x256xf32, #tpu.memory_space<vmem>>, %arg3: memref<2x64x4xf32, #tpu.memory_space<vmem>>) attributes {dimension_semantics = [#tpu.dimension_semantics<parallel>], iteration_bounds = array<i64: 1>, scalar_prefetch = 0 : i64, scratch_operands = 0 : i64, tpu.core_type = #tpu.core_type<tc>, window_params = [{pipeline_mode = #tpu.pipeline_mode<synchronous>, transform_indices = @transform_0, window_bounds = array<i64: 256, 64>}, {transform_indices = @transform_1, window_bounds = array<i64: 2, 4, 256>}, {transform_indices = @transform_2, window_bounds = array<i64: 2, 64, 4>}]} {
    %c0 = arith.constant 0 : index
    %c0_0 = arith.constant 0 : index
    %0 = vector.load %arg1[%c0, %c0_0] : memref<256x64xf32, #tpu.memory_space<vmem>>, vector<256x64xf32>
    %c0_1 = arith.constant 0 : index
    %c0_2 = arith.constant 0 : index
    %c0_3 = arith.constant 0 : index
    %1 = vector.load %arg2[%c0_1, %c0_2, %c0_3] : memref<2x4x256xf32, #tpu.memory_space<vmem>>, vector<1x4x256xf32>
    %2 = vector.shape_cast %1 : vector<1x4x256xf32> to vector<4x256xf32>
    %cst = arith.constant dense<0.000000e+00> : vector<4x64xf32>
    %3 = tpu.matmul %2, %0, %cst {dimension_numbers = #tpu.dot_dimension_numbers<[1], [0], [0], [1], [0, 0, 1, 1], [], []>} : vector<4x256xf32>, vector<256x64xf32>, vector<4x64xf32> -> vector<4x64xf32>
    %4 = tpu.transpose %3, [1, 0] : vector<4x64xf32> -> vector<64x4xf32>
    %c0_4 = arith.constant 0 : index
    %c0_5 = arith.constant 0 : index
    %c0_6 = arith.constant 0 : index
    %5 = vector.load %arg3[%c0_4, %c0_5, %c0_6] : memref<2x64x4xf32, #tpu.memory_space<vmem>>, vector<1x64x4xf32>
    %6 = vector.shape_cast %5 : vector<1x64x4xf32> to vector<64x4xf32>
    %7 = vector.shape_cast %4 : vector<64x4xf32> to vector<1x64x4xf32>
    tpu.vector_store %arg3[%c0_4, %c0_5, %c0_6], %7 {strides = array<i32>} : memref<2x64x4xf32, #tpu.memory_space<vmem>>, vector<1x64x4xf32>,
    %c1 = arith.constant 1 : index
    %c0_7 = arith.constant 0 : index
    %c0_8 = arith.constant 0 : index
    %8 = vector.load %arg2[%c1, %c0_7, %c0_8] : memref<2x4x256xf32, #tpu.memory_space<vmem>>, vector<1x4x256xf32>
    %9 = vector.shape_cast %8 : vector<1x4x256xf32> to vector<4x256xf32>
    %cst_9 = arith.constant dense<0.000000e+00> : vector<4x64xf32>
    %10 = tpu.matmul %9, %0, %cst_9 {dimension_numbers = #tpu.dot_dimension_numbers<[1], [0], [0], [1], [0, 0, 1, 1], [], []>} : vector<4x256xf32>, vector<256x64xf32>, vector<4x64xf32> -> vector<4x64xf32>
    %11 = tpu.transpose %10, [1, 0] : vector<4x64xf32> -> vector<64x4xf32>
    %c1_10 = arith.constant 1 : index
    %c0_11 = arith.constant 0 : index
    %c0_12 = arith.constant 0 : index
    %12 = vector.load %arg3[%c1_10, %c0_11, %c0_12] : memref<2x64x4xf32, #tpu.memory_space<vmem>>, vector<1x64x4xf32>
    %13 = vector.shape_cast %12 : vector<1x64x4xf32> to vector<64x4xf32>
    %14 = vector.shape_cast %11 : vector<64x4xf32> to vector<1x64x4xf32>
    tpu.vector_store %arg3[%c1_10, %c0_11, %c0_12], %14 {strides = array<i32>} : memref<2x64x4xf32, #tpu.memory_space<vmem>>, vector<1x64x4xf32>,
    return
  }
  func.func @transform_0(%arg0: i32) -> (i32, i32) {
    %c0_i32 = arith.constant 0 : i32
    %c0_i32_0 = arith.constant 0 : i32
    %c0_i32_1 = arith.constant 0 : i32
    return %c0_i32, %c0_i32_0 : i32, i32
  }
  func.func @transform_1(%arg0: i32) -> (i32, i32, i32) {
    %c0_i32 = arith.constant 0 : i32
    %c0_i32_0 = arith.constant 0 : i32
    %c0_i32_1 = arith.constant 0 : i32
    return %arg0, %c0_i32, %c0_i32_0 : i32, i32, i32
  }
  func.func @transform_2(%arg0: i32) -> (i32, i32, i32) {
    %c0_i32 = arith.constant 0 : i32
    %c0_i32_0 = arith.constant 0 : i32
    %c0_i32_1 = arith.constant 0 : i32
    return %arg0, %c0_i32, %c0_i32_0 : i32, i32, i32
  }
}

</mosaic_0001>

<bundles_post_ra>
// kernel: tpu_custom_call.1
= control target key start
LH: loop header
LB: loop body
LE: loop exit
PB: predicated region body
PF: predicated region fallthrough
CT: control target
= control target key end

     0   :  { %vm122_vm0 = vcmask 31744   ;;  %s415_s0 = inlined_call_operand.vmem [shape: f32[256,64], index: 0, kind: input, shape index: {}]   ;;  %s416_s1 = inlined_call_operand.vmem [shape: f32[2,4,256], index: 1, kind: input, shape index: {}]   ;;  %s417_s2 = inlined_call_operand.vmem [shape: f32[2,64,4], index: 2, kind: output, shape index: {}]  }
   0x1   :  { %v26_v0 = vld [vmem:[%s415_s0 + $0x78] sm:$0xff]  ;;  %v25_v2 = vld [vmem:[%s415_s0 + $0x70] sm:$0xff]  ;;  %v24_v4 = vld [vmem:[%s415_s0 + $0x68] sm:$0xff] }
   0x2   :  { %v42_v1 = vld [vmem:[%s415_s0 + $0xf8] sm:$0xff]  ;;  %50 = vmatpush.msra.mxu0 %v26_v0  ;;  %v41_v3 = vld [vmem:[%s415_s0 + $0xf0] sm:$0xff]  ;;  %v40_v5 = vld [vmem:[%s415_s0 + $0xe8] sm:$0xff]  ;;  %139 = vmatpush.msra.mxu2 %v26_v0 }
   0x3   :  { %70 = vmatpush.msra.mxu1 %v42_v1  ;;  %159 = vmatpush.msra.mxu3 %v42_v1  ;;  %v23_v6 = vld [vmem:[%s415_s0 + $0x60] sm:$0xff]  ;;  %v22_v8 = vld [vmem:[%s415_s0 + $0x58] sm:$0xff]  ;;  %v21_v10 = vld [vmem:[%s415_s0 + $0x50] sm:$0xff] }
   0x4   :  { %51 = vmatpush.msra.mxu0 %v25_v2  ;;  %v39_v7 = vld [vmem:[%s415_s0 + $0xe0] sm:$0xff]  ;;  %140 = vmatpush.msra.mxu2 %v25_v2  ;;  %v38_v9 = vld [vmem:[%s415_s0 + $0xd8] sm:$0xff]  ;;  %v37_v11 = vld [vmem:[%s415_s0 + $0xd0] sm:$0xff] }
   0x5   :  { %71 = vmatpush.msra.mxu1 %v41_v3  ;;  %160 = vmatpush.msra.mxu3 %v41_v3  ;;  %v20_v12 = vld [vmem:[%s415_s0 + $0x48] sm:$0xff]  ;;  %v43_v14 = vld [vmem:[%s416_s1] sm:$0xff]  ;;  %v18_v17 = vld [vmem:[%s415_s0 + $0x38] sm:$0xff] }
   0x6   :  { %52 = vmatpush.msra.mxu0 %v24_v4  ;;  %141 = vmatpush.msra.mxu2 %v24_v4  ;;  %v36_v13 = vld [vmem:[%s415_s0 + $0xc8] sm:$0xff]  ;;  %45 = vst [vmem:[#allocation1] ss:$2 sm:$0xff] %v43_v14  ;;  %v19_v15 = vld [vmem:[%s415_s0 + $0x40] sm:$0xff]  ;;  %v34_v18 = vld [vmem:[%s415_s0 + $0xb8] sm:$0xff] }
   0x7   :  { %72 = vmatpush.msra.mxu1 %v40_v5  ;;  %161 = vmatpush.msra.mxu3 %v40_v5  ;;  %v35_v16 = vld [vmem:[%s415_s0 + $0xc0] sm:$0xff]  ;;  %v17_v19 = vld [vmem:[%s415_s0 + $0x30] sm:$0xff]  ;;  %v224_v21 = vld [vmem:[%s416_s1 + $0x8] sm:$0xff] }
   0x8   :  { %53 = vmatpush.msra.mxu0 %v23_v6  ;;  %142 = vmatpush.msra.mxu2 %v23_v6  ;;  %v33_v20 = vld [vmem:[%s415_s0 + $0xb0] sm:$0xff]  ;;  %v16_v22 = vld [vmem:[%s415_s0 + $0x28] sm:$0xff]  ;;  %v15_v26 = vld [vmem:[%s415_s0 + $0x20] sm:$0xff] }
   0x9   :  { %73 = vmatpush.msra.mxu1 %v39_v7  ;;  %162 = vmatpush.msra.mxu3 %v39_v7  ;;  %v32_v23 = vld [vmem:[%s415_s0 + $0xa8] sm:$0xff]  ;;  %v31_v27 = vld [vmem:[%s415_s0 + $0xa0] sm:$0xff]  ;;  %v14_v28 = vld [vmem:[%s415_s0 + $0x18] sm:$0xff] }
   0xa   :  { %54 = vmatpush.msra.mxu0 %v22_v8  ;;  %143 = vmatpush.msra.mxu2 %v22_v8  ;;  %v30_v29 = vld [vmem:[%s415_s0 + $0x98] sm:$0xff]  ;;  %v13_v30 = vld [vmem:[%s415_s0 + $0x10] sm:$0xff]  ;;  %v12_v32 = vld [vmem:[%s415_s0 + $0x8] sm:$0xff] }
   0xb   :  { %74 = vmatpush.msra.mxu1 %v38_v9  ;;  %163 = vmatpush.msra.mxu3 %v38_v9  ;;  %v29_v31 = vld [vmem:[%s415_s0 + $0x90] sm:$0xff]  ;;  %v28_v33 = vld [vmem:[%s415_s0 + $0x88] sm:$0xff]  ;;  %v11_v34 = vld [vmem:[%s415_s0] sm:$0xff] }
   0xc   :  { %55 = vmatpush.msra.mxu0 %v21_v10  ;;  %144 = vmatpush.msra.mxu2 %v21_v10  ;;  %v27_v35 = vld [vmem:[%s415_s0 + $0x80] sm:$0xff] }
   0xd   :  { %75 = vmatpush.msra.mxu1 %v37_v11  ;;  %164 = vmatpush.msra.mxu3 %v37_v11  ;;  %v46_v24 = vld.sshfl [vmem:[#allocation1] sm:$0xff pattern:$0x75316420]  ;;  %v47_v25 = vld.sshfl [vmem:[#allocation1 + $0x8] sm:$0xff pattern:$0x75316420] }
   0xe   :  { %56 = vmatpush.msra.mxu0 %v20_v12  ;;  %145 = vmatpush.msra.mxu2 %v20_v12  ;;  %134 = vst [vmem:[#allocation1] ss:$2 sm:$0xff] %v224_v21 }
   0xf   :  { %76 = vmatpush.msra.mxu1 %v36_v13  ;;  %165 = vmatpush.msra.mxu3 %v36_v13 }
  0x10   :  { %57 = vmatpush.msra.mxu0 %v19_v15  ;;  %146 = vmatpush.msra.mxu2 %v19_v15 }
  0x11   :  { %77 = vmatpush.msra.mxu1 %v35_v16  ;;  %166 = vmatpush.msra.mxu3 %v35_v16 }
  0x12   :  { %58 = vmatpush.msra.mxu0 %v18_v17  ;;  %147 = vmatpush.msra.mxu2 %v18_v17 }
  0x13   :  { %78 = vmatpush.msra.mxu1 %v34_v18  ;;  %167 = vmatpush.msra.mxu3 %v34_v18 }
  0x14   :  { %59 = vmatpush.msra.mxu0 %v17_v19  ;;  %148 = vmatpush.msra.mxu2 %v17_v19 }
  0x15   :  { %79 = vmatpush.msra.mxu1 %v33_v20  ;;  %168 = vmatpush.msra.mxu3 %v33_v20  ;;  %v135_v36 = vld.sshfl [vmem:[#allocation1] sm:$0xff pattern:$0x75316420]  ;;  %v136_v37 = vld.sshfl [vmem:[#allocation1 + $0x8] sm:$0xff pattern:$0x75316420] }
  0x16   :  { %60 = vmatpush.msra.mxu0 %v16_v22  ;;  %149 = vmatpush.msra.mxu2 %v16_v22 }
  0x17   :  { %80 = vmatpush.msra.mxu1 %v32_v23  ;;  %169 = vmatpush.msra.mxu3 %v32_v23 }
  0x18   :  { %61 = vmatpush.msra.mxu0 %v15_v26  ;;  %150 = vmatpush.msra.mxu2 %v15_v26 }
  0x19   :  { %81 = vmatpush.msra.mxu1 %v31_v27  ;;  %170 = vmatpush.msra.mxu3 %v31_v27 }
  0x1a   :  { %62 = vmatpush.msra.mxu0 %v14_v28  ;;  %151 = vmatpush.msra.mxu2 %v14_v28 }
  0x1b   :  { %82 = vmatpush.msra.mxu1 %v30_v29  ;;  %171 = vmatpush.msra.mxu3 %v30_v29 }
  0x1c   :  { %63 = vmatpush.msra.mxu0 %v13_v30  ;;  %152 = vmatpush.msra.mxu2 %v13_v30 }
  0x1d   :  { %83 = vmatpush.msra.mxu1 %v29_v31  ;;  %172 = vmatpush.msra.mxu3 %v29_v31 }
  0x1e   :  { %64 = vmatpush.msra.mxu0 %v12_v32  ;;  %153 = vmatpush.msra.mxu2 %v12_v32 }
  0x1f   :  { %84 = vmatpush.msra.mxu1 %v28_v33  ;;  %173 = vmatpush.msra.mxu3 %v28_v33 }
  0x20   :  { %65 = vmatpush.msra.mxu0 %v11_v34  ;;  %154 = vmatpush.msra.mxu2 %v11_v34 }
  0x21   :  { %85 = vmatpush.msra.mxu1 %v27_v35  ;;  %66 = vmatmul.f32.vlgmr.msra.gmra.mxu0 %v46_v24 }
  0x22   :  { %86 = vmatmul.f32.vlgmr.msra.gmra.mxu1 %v47_v25  ;;  %174 = vmatpush.msra.mxu3 %v27_v35 }
  0x23   :  { %155 = vmatmul.f32.vlgmr.msra.gmra.mxu2 %v135_v36  ;;  %175 = vmatmul.f32.vlgmr.msra.gmra.mxu3 %v136_v37 }
  0x9e   :  { %v67_v38 = vpop.f32.mrf.mxu0 }
  0x9f   :  { %v87_v39 = vpop.f32.mrf.mxu1 }
  0xa0   :  { %v88_v40 = vadd.f32 %v87_v39, %v67_v38 }
  0xa2   :  { %90 = vxpose.xlu0.b32.start.end [1/1] (short) (narrow) %v88_v40, 64 }
  0xa6   :  { %v156_v41 = vpop.f32.mrf.mxu2  ;;  %v176_v42 = vpop.f32.mrf.mxu3 }
  0xa7   :  { %v177_v43 = vadd.f32 %v176_v42, %v156_v41 }
  0xe2   :  { %179 = vxpose.xlu0.b32.start.end [1/1] (short) (narrow) %v177_v43, 64 }
 0x146   :  { %v106_v44 = vpop.trf.xlu0 }
 0x147   :  { %123 = vst.msk [vmem:[%s417_s2] sm:$0xff] %vm122_vm0, %v106_v44 }
 0x14e   :  { %v107_v45 = vpop.trf.xlu0 }
 0x14f   :  { %124 = vst.msk [vmem:[%s417_s2 + $0x8] sm:$0xff] %vm122_vm0, %v107_v45 }
 0x156   :  { %v108_v46 = vpop.trf.xlu0 }
 0x157   :  { %125 = vst.msk [vmem:[%s417_s2 + $0x10] sm:$0xff] %vm122_vm0, %v108_v46 }
 0x15e   :  { %v109_v47 = vpop.trf.xlu0 }
 0x15f   :  { %126 = vst.msk [vmem:[%s417_s2 + $0x18] sm:$0xff] %vm122_vm0, %v109_v47 }
 0x166   :  { %v110_v48 = vpop.trf.xlu0 }
 0x167   :  { %127 = vst.msk [vmem:[%s417_s2 + $0x20] sm:$0xff] %vm122_vm0, %v110_v48 }
 0x16e   :  { %v111_v49 = vpop.trf.xlu0 }
 0x16f   :  { %128 = vst.msk [vmem:[%s417_s2 + $0x28] sm:$0xff] %vm122_vm0, %v111_v49 }
 0x176   :  { %v112_v50 = vpop.trf.xlu0 }
 0x177   :  { %129 = vst.msk [vmem:[%s417_s2 + $0x30] sm:$0xff] %vm122_vm0, %v112_v50 }
 0x17e   :  { %v113_v51 = vpop.trf.xlu0 }
 0x17f   :  { %130 = vst.msk [vmem:[%s417_s2 + $0x38] sm:$0xff] %vm122_vm0, %v113_v51 }
 0x186   :  { %v195_v52 = vpop.trf.xlu0 }
 0x187   :  { %225 = vst.msk [vmem:[%s417_s2 + $0x40] sm:$0xff] %vm122_vm0, %v195_v52 }
 0x18e   :  { %v196_v53 = vpop.trf.xlu0 }
 0x18f   :  { %226 = vst.msk [vmem:[%s417_s2 + $0x48] sm:$0xff] %vm122_vm0, %v196_v53 }
 0x196   :  { %v197_v54 = vpop.trf.xlu0 }
 0x197   :  { %227 = vst.msk [vmem:[%s417_s2 + $0x50] sm:$0xff] %vm122_vm0, %v197_v54 }
 0x19e   :  { %v198_v55 = vpop.trf.xlu0 }
 0x19f   :  { %228 = vst.msk [vmem:[%s417_s2 + $0x58] sm:$0xff] %vm122_vm0, %v198_v55 }
 0x1a6   :  { %v199_v56 = vpop.trf.xlu0 }
 0x1a7   :  { %229 = vst.msk [vmem:[%s417_s2 + $0x60] sm:$0xff] %vm122_vm0, %v199_v56 }
 0x1ae   :  { %v200_v57 = vpop.trf.xlu0 }
 0x1af   :  { %230 = vst.msk [vmem:[%s417_s2 + $0x68] sm:$0xff] %vm122_vm0, %v200_v57 }
 0x1b6   :  { %v201_v58 = vpop.trf.xlu0 }
 0x1b7   :  { %231 = vst.msk [vmem:[%s417_s2 + $0x70] sm:$0xff] %vm122_vm0, %v201_v58 }
 0x1be   :  { %v202_v59 = vpop.trf.xlu0 }
 0x1bf   :  { %232 = vst.msk [vmem:[%s417_s2 + $0x78] sm:$0xff] %vm122_vm0, %v202_v59 }

</bundles_post_ra>
